<compile_context>
chip_gen: v5e
topology: v5e:2x2
jax: 0.10.0
libtpu: 0.0.40
codegen_flags: <defaults>
</compile_context>

<pallas_src>
import jax
import jax.numpy as jnp
from jax import lax
from jax.experimental import pallas as pl
from jax.experimental.pallas import tpu as pltpu

HIDDEN = 32     # hidden_size
VOCAB = 64      # input_size (embedding rows)
SEQ_LEN = 8     # demo sequence length for the in-kernel time loop


# --------------------------------- kernel ------------------------------------

def _encoder_lstm_kernel(tok_ref,                       # SMEM (S,) scalar prefetch
                         embp_ref, whh_ref,             # VMEM: (V,4H), (H,4H)
                         h0_ref, c0_ref,                # VMEM: (1,H), (1,H)
                         outs_ref, state_ref):          # VMEM out: (1,S*H), (2,H)
    H = h0_ref.shape[-1]
    S = tok_ref.shape[0]
    V = embp_ref.shape[0]

    # Resident recurrent weight, hoisted out of the unrolled loop.
    whh = whh_ref[...]                                   # (H, 4H)

    # Recurrent state carried as register values (no VMEM scratch round trip).
    h = h0_ref[...]                                      # (1, H)
    c = c0_ref[...]                                      # (1, H)

    # Fully unrolled time loop with static indices (S is small & static).
    for t in range(S):
        # Embedding lookup is already fused with the input projection + bias:
        # emb_proj[v] = emb[v] @ W_ih^T + (b_ih + b_hh)  (g-gate cols pre-scaled x2).
        tok = jnp.clip(tok_ref[t], 0, V - 1)             # OOB-safe gather
        x_proj = embp_ref[pl.ds(tok, 1), :]              # (1, 4H)

        # Only the recurrent contraction remains on the serial chain.
        gates = x_proj + jnp.dot(h, whh, preferred_element_type=jnp.float32)

        # One EUP pass over the full (1, 4H) vreg; tanh(g) recovered on the VPU.
        s = jax.nn.sigmoid(gates)
        i_g = s[:, 0 * H:1 * H]
        f_g = s[:, 1 * H:2 * H]
        g_g = 2.0 * s[:, 2 * H:3 * H] - 1.0              # tanh(g) = 2*sigmoid(2g) - 1
        o_g = s[:, 3 * H:4 * H]

        c = f_g * c + i_g * g_g
        h = o_g * jnp.tanh(c)

        # Lane-dense per-step output: static lane slice into the (1, S*H) slab.
        outs_ref[:, t * H:(t + 1) * H] = h

    # Packed final (h, c) state.
    state_ref[0:1, :] = h
    state_ref[1:2, :] = c


def _lstm_seq(tokens, h0, c0, kparams):
    """tokens: int32 (S,); h0/c0: (1,H). Returns (outs (1,S*H), state (2,H))."""
    S = tokens.shape[0]
    H = HIDDEN
    V = kparams["emb_proj"].shape[0]

    grid_spec = pltpu.PrefetchScalarGridSpec(
        num_scalar_prefetch=1,                               # token ids -> SMEM
        grid=(1,),                                           # single step; loop is in-kernel
        in_specs=[
            pl.BlockSpec((V, 4 * H), lambda i, toks: (0, 0)),   # fused emb projection
            pl.BlockSpec((H, 4 * H), lambda i, toks: (0, 0)),   # W_hh^T (g cols x2)
            pl.BlockSpec((1, H), lambda i, toks: (0, 0)),       # h0
            pl.BlockSpec((1, H), lambda i, toks: (0, 0)),       # c0
        ],
        out_specs=[
            pl.BlockSpec((1, S * H), lambda i, toks: (0, 0)),   # lane-dense h_t slab
            pl.BlockSpec((2, H), lambda i, toks: (0, 0)),       # final (h, c)
        ],
    )

    outs, state = pl.pallas_call(
        _encoder_lstm_kernel,
        out_shape=(
            jax.ShapeDtypeStruct((1, S * H), jnp.float32),
            jax.ShapeDtypeStruct((2, H), jnp.float32),
        ),
        grid_spec=grid_spec,
        compiler_params=pltpu.CompilerParams(
            dimension_semantics=("arbitrary",)),
    )(tokens, kparams["emb_proj"], kparams["w_hh_t"], h0, c0)
    return outs, state


# -------------------------------- wrappers ------------------------------------

@jax.jit
def encoder_rnn_forward(token, hidden, cell, kparams):
    """Single step, matching EncoderRNN.forward.

    token: int (1,); hidden/cell: (1,1,H). Returns (output, (hidden, cell)).
    """
    H = HIDDEN
    outs, state = _lstm_seq(token.astype(jnp.int32).reshape(-1),
                            hidden.reshape(1, H), cell.reshape(1, H), kparams)
    out = outs.reshape(1, 1, H)                  # seq_len = 1 -> output == h_new
    h_new = state[0:1].reshape(1, 1, H)
    c_new = state[1:2].reshape(1, 1, H)
    return out, (h_new, c_new)


@jax.jit
def encoder_rnn_encode(tokens, hidden, cell, kparams):
    """Full-sequence encode with the (unrolled) timestep loop inside the kernel."""
    H = HIDDEN
    S = tokens.shape[0]
    outs, state = _lstm_seq(tokens.astype(jnp.int32).reshape(-1),
                            hidden.reshape(1, H), cell.reshape(1, H), kparams)
    outs = outs.reshape(S, 1, H)
    return outs, (state[0:1].reshape(1, 1, H), state[1:2].reshape(1, 1, H))


# ----------------------------- pure-JAX reference ------------------------------
# The reference uses the *natural* (PyTorch-layout) parameters and standard
# LSTM math, so it independently checks the fused/pre-scaled kernel params.

def _lstm_step_ref(natural, h, c, tok):
    H = HIDDEN
    x = natural["embedding"][tok][None, :]
    gates = (x @ natural["w_ih"].T + h @ natural["w_hh"].T
             + (natural["b_ih"] + natural["b_hh"])[None, :])
    i_g = jax.nn.sigmoid(gates[:, 0 * H:1 * H])
    f_g = jax.nn.sigmoid(gates[:, 1 * H:2 * H])
    g_g = jnp.tanh(gates[:, 2 * H:3 * H])
    o_g = jax.nn.sigmoid(gates[:, 3 * H:4 * H])
    c_new = f_g * c + i_g * g_g
    h_new = o_g * jnp.tanh(c_new)
    return h_new, c_new


def _reference_encode(tokens, hidden, cell, natural):
    H = HIDDEN

    def step(carry, tok):
        h, c = carry
        h_new, c_new = _lstm_step_ref(natural, h, c, tok)
        return (h_new, c_new), h_new

    (h, c), outs = lax.scan(step, (hidden.reshape(1, H), cell.reshape(1, H)), tokens)
    return outs.reshape(-1, 1, H), (h.reshape(1, 1, H), c.reshape(1, 1, H))


def _reference_forward(token, hidden, cell, natural):
    outs, (h, c) = _reference_encode(token, hidden, cell, natural)
    return outs.reshape(1, 1, HIDDEN), (h, c)


# ----------------------------------- params ------------------------------------

def init_params(key):
    """Deterministic synthetic parameters (PyTorch-style uniform init).

    Returns (natural, kernel_params):
      natural: embedding (V,H), w_ih/w_hh (4H,H), b_ih/b_hh (4H,)  [reference]
      kernel_params:
        emb_proj (V,4H) = embedding @ W_ih^T + (b_ih + b_hh), g cols x2
        w_hh_t   (H,4H) = W_hh^T, g cols x2
    """
    H, V = HIDDEN, VOCAB
    k_emb, k_wih, k_whh, k_bih, k_bhh = jax.random.split(key, 5)
    bound = 1.0 / jnp.sqrt(H)
    embedding = jax.random.normal(k_emb, (V, H), jnp.float32)
    w_ih = jax.random.uniform(k_wih, (4 * H, H), jnp.float32, -bound, bound)
    w_hh = jax.random.uniform(k_whh, (4 * H, H), jnp.float32, -bound, bound)
    b_ih = jax.random.uniform(k_bih, (4 * H,), jnp.float32, -bound, bound)
    b_hh = jax.random.uniform(k_bhh, (4 * H,), jnp.float32, -bound, bound)

    natural = {"embedding": embedding, "w_ih": w_ih, "w_hh": w_hh,
               "b_ih": b_ih, "b_hh": b_hh}

    # g-gate (columns 2H:3H) pre-scaled by 2 so the kernel can recover
    # tanh(g) = 2*sigmoid(2g) - 1 from its single sigmoid pass.
    g_scale = jnp.ones((4 * H,), jnp.float32).at[2 * H:3 * H].set(2.0)
    emb_proj = (embedding @ w_ih.T + (b_ih + b_hh)[None, :]) * g_scale[None, :]
    w_hh_t = w_hh.T * g_scale[None, :]
    kernel_params = {"emb_proj": emb_proj, "w_hh_t": w_hh_t}
    return natural, kernel_params


if __name__ == "__main__":
    key = jax.random.PRNGKey(0)
    k_params, k_tok, k_h, k_c, k_seq = jax.random.split(key, 5)

    natural, kparams = init_params(k_params)

    # ---- single-step forward (exact EncoderRNN.forward semantics) ----
    token = jax.random.randint(k_tok, (1,), 0, VOCAB, dtype=jnp.int32)
    hidden = jax.random.normal(k_h, (1, 1, HIDDEN), jnp.float32)
    cell = jax.random.normal(k_c, (1, 1, HIDDEN), jnp.float32)

    out, (h_new, c_new) = encoder_rnn_forward(token, hidden, cell, kparams)
    jax.block_until_ready((out, h_new, c_new))

    ref_out, (ref_h, ref_c) = _reference_forward(token, hidden, cell, natural)
    assert out.shape == (1, 1, HIDDEN)
    assert jnp.allclose(out, ref_out, atol=1e-5)
    assert jnp.allclose(h_new, ref_h, atol=1e-5)
    assert jnp.allclose(c_new, ref_c, atol=1e-5)

    # ---- full-sequence encode (in-kernel unrolled time loop) ----
    seq = jax.random.randint(k_seq, (SEQ_LEN,), 0, VOCAB, dtype=jnp.int32)
    h0 = jnp.zeros((1, 1, HIDDEN), jnp.float32)
    c0 = jnp.zeros((1, 1, HIDDEN), jnp.float32)

    outs, (h_s, c_s) = encoder_rnn_encode(seq, h0, c0, kparams)
    jax.block_until_ready((outs, h_s, c_s))

    ref_outs, (ref_hs, ref_cs) = _reference_encode(seq, h0, c0, natural)
    assert outs.shape == (SEQ_LEN, 1, HIDDEN)
    assert jnp.allclose(outs, ref_outs, atol=1e-4)
    assert jnp.allclose(h_s, ref_hs, atol=1e-4)
    assert jnp.allclose(c_s, ref_cs, atol=1e-4)

    print("KERNEL_OK")
</pallas_src>

<mosaic_0001>
module attributes {stable_mosaic.version = 11 : i64} {
  func.func @_encoder_lstm_kernel(%arg0: i32, %arg1: memref<1xi32, #tpu.memory_space<smem>>, %arg2: memref<64x128xf32, #tpu.memory_space<vmem>>, %arg3: memref<32x128xf32, #tpu.memory_space<vmem>>, %arg4: memref<1x32xf32, #tpu.memory_space<vmem>>, %arg5: memref<1x32xf32, #tpu.memory_space<vmem>>, %arg6: memref<1x32xf32, #tpu.memory_space<vmem>>, %arg7: memref<2x32xf32, #tpu.memory_space<vmem>>) attributes {dimension_semantics = [#tpu.dimension_semantics<arbitrary>], iteration_bounds = array<i64: 1>, scalar_prefetch = 1 : i64, scratch_operands = 0 : i64, tpu.core_type = #tpu.core_type<tc>, window_params = [{pipeline_mode = #tpu.pipeline_mode<synchronous>, transform_indices = @transform_0, window_bounds = array<i64: 64, 128>}, {pipeline_mode = #tpu.pipeline_mode<synchronous>, transform_indices = @transform_1, window_bounds = array<i64: 32, 128>}, {pipeline_mode = #tpu.pipeline_mode<synchronous>, transform_indices = @transform_2, window_bounds = array<i64: 1, 32>}, {pipeline_mode = #tpu.pipeline_mode<synchronous>, transform_indices = @transform_3, window_bounds = array<i64: 1, 32>}, {pipeline_mode = #tpu.pipeline_mode<synchronous>, transform_indices = @transform_4, window_bounds = array<i64: 1, 32>}, {pipeline_mode = #tpu.pipeline_mode<synchronous>, transform_indices = @transform_5, window_bounds = array<i64: 2, 32>}]} {
    %c0 = arith.constant 0 : index
    %c0_0 = arith.constant 0 : index
    %0 = vector.load %arg3[%c0, %c0_0] : memref<32x128xf32, #tpu.memory_space<vmem>>, vector<32x128xf32>
    %c0_1 = arith.constant 0 : index
    %c0_2 = arith.constant 0 : index
    %1 = vector.load %arg4[%c0_1, %c0_2] : memref<1x32xf32, #tpu.memory_space<vmem>>, vector<1x32xf32>
    %c0_3 = arith.constant 0 : index
    %c0_4 = arith.constant 0 : index
    %2 = vector.load %arg5[%c0_3, %c0_4] : memref<1x32xf32, #tpu.memory_space<vmem>>, vector<1x32xf32>
    %c0_5 = arith.constant 0 : index
    %3 = memref.load %arg1[%c0_5] : memref<1xi32, #tpu.memory_space<smem>>
    %c0_i32 = arith.constant 0 : i32
    %c63_i32 = arith.constant 63 : i32
    %4 = arith.maxsi %c0_i32, %3 : i32
    %5 = arith.minsi %c63_i32, %4 : i32
    %6 = arith.index_cast %5 : i32 to index
    %c0_6 = arith.constant 0 : index
    %7 = vector.load %arg2[%6, %c0_6] : memref<64x128xf32, #tpu.memory_space<vmem>>, vector<1x128xf32>
    %cst = arith.constant dense<0.000000e+00> : vector<1x128xf32>
    %8 = tpu.matmul %1, %0, %cst {dimension_numbers = #tpu.dot_dimension_numbers<[1], [0], [0], [1], [0, 0, 1, 1], [], []>} : vector<1x32xf32>, vector<32x128xf32>, vector<1x128xf32> -> vector<1x128xf32>
    %9 = arith.addf %7, %8 : vector<1x128xf32>
    %10 = arith.negf %9 : vector<1x128xf32>
    %11 = math.exp %10 : vector<1x128xf32>
    %cst_7 = arith.constant 1.000000e+00 : f32
    %12 = vector.broadcast %cst_7 : f32 to vector<1x128xf32>
    %13 = arith.addf %12, %11 : vector<1x128xf32>
    %14 = arith.divf %12, %13 : vector<1x128xf32>
    %15 = vector.extract_strided_slice %14 {offsets = [0, 0], sizes = [1, 32], strides = [1, 1]} : vector<1x128xf32> to vector<1x32xf32>
    %16 = vector.extract_strided_slice %14 {offsets = [0, 32], sizes = [1, 32], strides = [1, 1]} : vector<1x128xf32> to vector<1x32xf32>
    %17 = vector.extract_strided_slice %14 {offsets = [0, 64], sizes = [1, 32], strides = [1, 1]} : vector<1x128xf32> to vector<1x32xf32>
    %cst_8 = arith.constant 2.000000e+00 : f32
    %18 = vector.broadcast %cst_8 : f32 to vector<1x32xf32>
    %19 = arith.mulf %18, %17 : vector<1x32xf32>
    %cst_9 = arith.constant 1.000000e+00 : f32
    %20 = vector.broadcast %cst_9 : f32 to vector<1x32xf32>
    %21 = arith.subf %19, %20 : vector<1x32xf32>
    %22 = vector.extract_strided_slice %14 {offsets = [0, 96], sizes = [1, 32], strides = [1, 1]} : vector<1x128xf32> to vector<1x32xf32>
    %23 = arith.mulf %16, %2 : vector<1x32xf32>
    %24 = arith.mulf %15, %21 : vector<1x32xf32>
    %25 = arith.addf %23, %24 : vector<1x32xf32>
    %26 = math.tanh %25 : vector<1x32xf32>
    %27 = arith.mulf %22, %26 : vector<1x32xf32>
    %c0_10 = arith.constant 0 : index
    %c0_11 = arith.constant 0 : index
    %28 = vector.load %arg6[%c0_10, %c0_11] : memref<1x32xf32, #tpu.memory_space<vmem>>, vector<1x32xf32>
    tpu.vector_store %arg6[%c0_10, %c0_11], %27 {strides = array<i32>} : memref<1x32xf32, #tpu.memory_space<vmem>>, vector<1x32xf32>,
    %c0_12 = arith.constant 0 : index
    %c0_13 = arith.constant 0 : index
    %29 = vector.load %arg7[%c0_12, %c0_13] : memref<2x32xf32, #tpu.memory_space<vmem>>, vector<1x32xf32>
    tpu.vector_store %arg7[%c0_12, %c0_13], %27 {strides = array<i32>} : memref<2x32xf32, #tpu.memory_space<vmem>>, vector<1x32xf32>,
    %c1 = arith.constant 1 : index
    %c0_14 = arith.constant 0 : index
    %30 = vector.load %arg7[%c1, %c0_14] : memref<2x32xf32, #tpu.memory_space<vmem>>, vector<1x32xf32>
    tpu.vector_store %arg7[%c1, %c0_14], %25 {strides = array<i32>} : memref<2x32xf32, #tpu.memory_space<vmem>>, vector<1x32xf32>,
    return
  }
  func.func @transform_0(%arg0: i32, %arg1: memref<1xi32, #tpu.memory_space<smem>>) -> (i32, i32) {
    %c0_i32 = arith.constant 0 : i32
    %c0_i32_0 = arith.constant 0 : i32
    %c0_i32_1 = arith.constant 0 : i32
    return %c0_i32, %c0_i32_0 : i32, i32
  }
  func.func @transform_1(%arg0: i32, %arg1: memref<1xi32, #tpu.memory_space<smem>>) -> (i32, i32) {
    %c0_i32 = arith.constant 0 : i32
    %c0_i32_0 = arith.constant 0 : i32
    %c0_i32_1 = arith.constant 0 : i32
    return %c0_i32, %c0_i32_0 : i32, i32
  }
  func.func @transform_2(%arg0: i32, %arg1: memref<1xi32, #tpu.memory_space<smem>>) -> (i32, i32) {
    %c0_i32 = arith.constant 0 : i32
    %c0_i32_0 = arith.constant 0 : i32
    %c0_i32_1 = arith.constant 0 : i32
    return %c0_i32, %c0_i32_0 : i32, i32
  }
  func.func @transform_3(%arg0: i32, %arg1: memref<1xi32, #tpu.memory_space<smem>>) -> (i32, i32) {
    %c0_i32 = arith.constant 0 : i32
    %c0_i32_0 = arith.constant 0 : i32
    %c0_i32_1 = arith.constant 0 : i32
    return %c0_i32, %c0_i32_0 : i32, i32
  }
  func.func @transform_4(%arg0: i32, %arg1: memref<1xi32, #tpu.memory_space<smem>>) -> (i32, i32) {
    %c0_i32 = arith.constant 0 : i32
    %c0_i32_0 = arith.constant 0 : i32
    %c0_i32_1 = arith.constant 0 : i32
    return %c0_i32, %c0_i32_0 : i32, i32
  }
  func.func @transform_5(%arg0: i32, %arg1: memref<1xi32, #tpu.memory_space<smem>>) -> (i32, i32) {
    %c0_i32 = arith.constant 0 : i32
    %c0_i32_0 = arith.constant 0 : i32
    %c0_i32_1 = arith.constant 0 : i32
    return %c0_i32, %c0_i32_0 : i32, i32
  }
}

</mosaic_0001>

<bundles_post_ra>
// kernel: encoder_rnn_forward.1
= control target key start
LH: loop header
LB: loop body
LE: loop exit
PB: predicated region body
PF: predicated region fallthrough
CT: control target
= control target key end

     0   :  { %13 = vsyncpa [#allocation5], 0  ;;  %s346_s0 = inlined_call_operand.<no memory space> [shape: s32[1], index: 0, kind: input, shape index: {}]   ;;  %s347_s1 = inlined_call_operand.hbm [shape: f32[64,128], index: 1, kind: input, shape index: {}]   ;;  %s348_s2 = inlined_call_operand.hbm [shape: f32[32,128], index: 2, kind: input, shape index: {}]   ;;  %s349_s3 = inlined_call_operand.vmem [shape: f32[1,32], index: 3, kind: input, shape index: {}]   ;;  %s350_s4 = inlined_call_operand.vmem [shape: f32[1,32], index: 4, kind: input, shape index: {}]   ;;  %s351_s5 = inlined_call_operand.hbm [shape: f32[1,32], index: 5, kind: output, shape index: {0}]   ;;  %s352_s6 = inlined_call_operand.vmem [shape: f32[2,32], index: 6, kind: output, shape index: {1}]  }
   0x1   :  { %14 = vsyncpa [#allocation8], 0 }
   0x2   :  { %15 = vsyncpa [#allocation6], 0  ;;  %s20_s23 = sshll.u32 %s347_s1, 4  ;;  %s273_s24 = smov [#allocation4]   ;;  %s21_s23 = int_to_ptr.hbm [resolvable:$true] %s20_s23 }
   0x3   :  { %s22_s25 = sshll.u32 %s273_s24, 4  ;;  %s33_s28 = sshll.u32 %s348_s2, 4  ;;  %s23_s25 = int_to_ptr.vmem [resolvable:$true] %s22_s25  ;;  %s34_s28 = int_to_ptr.hbm [resolvable:$true] %s33_s28 }
   0x4   :  { %s274_s29 = smov 128   ;;  %s275_s30 = smov 8  }
   0x5   :  { %28 = dma.hbm_to_vmem [thread:$0]  %s21_s23, 1024, %s23_s25, [#allocation5], %s274_s29, %s274_s29, %s275_s30  }
   0x6   :  { %s276_s7 = smov [#allocation7]  }
   0x7   :  { %s35_s8 = sshll.u32 %s276_s7, 4  ;;  %s36_s8 = int_to_ptr.vmem [resolvable:$true] %s35_s8 }
   0x8   :  { %41 = dma.hbm_to_vmem [thread:$0]  %s34_s28, 512, %s36_s8, [#allocation8], %s274_s29, %s274_s29, %s275_s30  }
   0x9   :  { %267 = dma.done.wait [#allocation5], 1024  }
   0xa   :  { %268 = vsyncadd [#allocation5], 4294966272 }
   0xb   :  { %269 = dma.done.wait [#allocation8], 512  }
   0xc   :  { %270 = vsyncadd [#allocation8], 4294966784  ;;  %v57_v0 = vld [vmem:[#allocation7 + $0x18] sm:$0xff]  ;;  %v56_v1 = vld [vmem:[#allocation7 + $0x10] sm:$0xff]  ;;  %vm67_vm0 = vcmask 261120   ;;  %p61_p0 = scmp.gt.s32.totalorder %s346_s0, 0 }
   0xd   :  { %83 = vmatpush.msra.mxu0 %v57_v0  ;;  %v55_v2 = vld [vmem:[#allocation7 + $0x8] sm:$0xff]  ;;  %v54_v3 = vld [vmem:[#allocation7] sm:$0xff]  ;;  %p170_p1 = scmp.lt.s32.totalorder %s346_s0, 63  ;;  %s278_s17 = smov 32   ;;  %vm139_vm5 = vcmask 253952  }
   0xe   :  { %v58_v4 = vld [vmem:[%s349_s3] sm:$0x1]  ;;  %s354_s0 = smov (!%p61_p0, %s346_s0), 0  ;;  %s279_s18 = smov 96  }
   0xf   :  { %84 = vmatpush.msra.mxu0 %v56_v1  ;;  %s356_s0 = smov (!%p170_p1, %s354_s0), 63  ;;  %v188_v23 = vld [vmem:[%s350_s4] ss:$0 sm:$0xff]  ;;  %s280_s19 = smov [#allocation9]  }
  0x10   :  { %s65_s15 = scalar_lea.vmem [#allocation4], %s356_s0  ;;  %s277_s0 = smov 64  }
  0x11   :  { %85 = vmatpush.msra.mxu0 %v55_v2  ;;  %v66_v5 = vld [vmem:[%s65_s15] sm:$0x1]  ;;  %s152_s20 = sshll.u32 %s280_s19, 4  ;;  %s154_s22 = sshll.u32 %s351_s5, 4  ;;  %s153_s20 = int_to_ptr.vmem [resolvable:$true] %s152_s20  ;;  %s155_s22 = int_to_ptr.hbm [resolvable:$true] %s154_s22 }
  0x13   :  { %86 = vmatpush.msra.mxu0 %v54_v3 }
  0x14   :  { %175 = vmatmul.msk.f32.vlgmr.msra.gmra.mxu0 %vm67_vm0, %v58_v4 }
  0x91   :  { %v88_v6 = vpop.f32.mrf.mxu0 }
  0x92   :  { %v91_v7 = vadd.f32 %v88_v6, %v66_v5 }
  0x94   :  { %v176_v8 = vmul.f32 -1.442695, %v91_v7 }
  0x96   :  { %189 = vpow2.f32 %v176_v8 }
  0x9c   :  { %v190_v9 = vpop.eup %189 }
  0x9d   :  { %v95_v10 = vadd.f32 1.0, %v190_v9 }
  0x9f   :  { %191 = vrcp.f32 %v95_v10  ;;  %v107_v14 = vand.u32 2147483648, %v95_v10  ;;  %v105_v16 = vand.u32 2147483647, %v95_v10  ;;  %vm101_vm2 = vweird.f32 %v95_v10 }
  0xa1   :  { %v108_v18 = vor.u32 1.1754944e-38, %v107_v14  ;;  %vm106_vm4 = vcmp.eq.f32.partialorder %v105_v16, 8.507059e+37 }
  0xa5   :  { %v192_v11 = vpop.eup %191 }
  0xa6   :  { %v97_v12 = vmul.f32 %v192_v11, %v95_v10  ;;  %vm102_vm1 = vweird.f32 %v192_v11 }
  0xa7   :  { %vm103_vm3 = vmor %vm101_vm2, %vm102_vm1 }
  0xa8   :  { %v98_v13 = vsub.f32 1.0, %v97_v12 }
  0xaa   :  { %v99_v15 = vmul.f32 %v192_v11, %v98_v13 }
  0xac   :  { %v100_v17 = vadd.f32 %v192_v11, %v99_v15 }
  0xae   :  { %v104_v19 = vsel %vm103_vm3, %v192_v11, %v100_v17 }
  0xaf   :  { %v109_v20 = vsel %vm106_vm4, %v108_v18, %v104_v19 }
  0xb0   :  { %v111_v21 = vmul.f32 2.0, %v109_v20 }
  0xb2   :  { %v177_v22 = vadd.f32 -1.0, %v111_v21 }
  0xb4   :  { %120 = vrot.lane.b32.xlu0 %v177_v22, %s277_s0 }
  0xbc   :  { %115 = vrot.lane.b32.xlu0 %v188_v23, %s278_s17 }
 0x126   :  { %v121_v24 = vpop.permute.xlu0 %120 }
 0x127   :  { %v123_v25 = vmul.f32 %v121_v24, %v109_v20 }
 0x129   :  { %125 = vrot.lane.b32.xlu1 %v123_v25, %s278_s17 }
 0x12e   :  { %v116_v26 = vpop.permute.xlu0 %115 }
 0x12f   :  { %v118_v27 = vmul.f32 %v116_v26, %v109_v20 }
 0x19b   :  { %v126_v28 = vpop.permute.xlu1 %125 }
 0x19c   :  { %v128_v29 = vadd.f32 %v126_v28, %v118_v27 }
 0x19e   :  { %193 = vtanh.f32 %v128_v29 }
 0x1a4   :  { %v194_v30 = vpop.eup %193 }
 0x1a5   :  { %131 = vrot.lane.b32.xlu1 %v194_v30, %s277_s0 }
 0x217   :  { %v132_v31 = vpop.permute.xlu1 %131 }
 0x218   :  { %v134_v32 = vmul.f32 %v132_v31, %v109_v20 }
 0x21a   :  { %136 = vrot.lane.b32.xlu2 %v134_v32, %s278_s17 }
 0x222   :  { %143 = vrot.lane.b32.xlu2 %v128_v29, %s279_s18 }
 0x274   :  { %v137_v33 = vpop.permute.xlu2 %136 }
 0x275   :  { %140 = vst.msk [vmem:[#allocation9] sm:$0x1] %vm139_vm5, %v137_v33 }
 0x276   :  { %141 = vst.msk [vmem:[%s352_s6] sm:$0x1] %vm139_vm5, %v137_v33  ;;  %157 = dma.vmem_to_hbm [thread:$0]  %s153_s20, 16, %s155_s22, [#allocation6]  }
 0x27c   :  { %v144_v34 = vpop.permute.xlu2 %143 }
 0x27d   :  { %146 = vst.msk [vmem:[%s352_s6 + $0x1] sm:$0x1] %vm139_vm5, %v144_v34 }
 0x27e   :  { %271 = dma.done.wait [#allocation6], 16  }
 0x27f   :  { %272 = vsyncadd [#allocation6], 4294967280 }
 0x280   :  { %166 = vsyncpa [#allocation5], 1 }
 0x281   :  { %167 = vsyncpa [#allocation8], 1 }
 0x282   :  { %168 = vsyncpa [#allocation6], 1 }

</bundles_post_ra>
